<compile_context>
chip_gen: v6e
topology: v6e:2x2x1
jax: 0.10.0
libtpu: 0.0.40
codegen_flags: <defaults>
</compile_context>

<pallas_src>
import functools

import jax
import jax.numpy as jnp
from jax import lax
from jax.experimental import pallas as pl
from jax.experimental.pallas import tpu as pltpu


def _nonlocal_kernel(H, W, Cc, wh_scale,
                     g_ref, l_ref, w_ref, shift_ref, o_ref):
    C = g_ref.shape[1]
    HW = H * W

    l = l_ref[0]                       # (C, HW)   residual + source of theta
    theta = l[:Cc, :]                  # (Cc, HW)  derived in-kernel (no extra DMA)
    g = g_ref[0]                       # (C, RHW)  subsampled activations
    phi = g[:Cc, :]                    # (Cc, RHW) derived from g (no extra DMA)

    # Channel-contraction form of the non-local block (identical math to the
    # spatial-contraction branch of the PyTorch module).
    # f1[i, j] = sum_r phi[i, r] * g[j, r]
    f1 = lax.dot_general(phi, g, (((1,), (1,)), ((), ())),
                         preferred_element_type=jnp.float32)      # (Cc, C)
    # Fold the module's `f / H * W` scale into the tiny matrix (C*Cc muls
    # instead of C*HW). NOTE: scale is W/H, matching the module as written.
    f1 = f1 * wh_scale
    # f[j, hw] = sum_i f1[i, j] * theta[i, hw]
    f = lax.dot_general(f1, theta, (((0,), (0,)), ((), ())),
                        preferred_element_type=jnp.float32)       # (C, HW)

    # Depthwise 3x3 conv, stride 1, padding 1, no bias, on the flattened lane
    # axis: per-tap XLU roll by (dy*W + dx) plus boundary masks (zero padding).
    hw_idx = lax.broadcasted_iota(jnp.int32, (C, HW), 1)
    col = hw_idx % W
    left_ok = col != 0                 # valid source for dx = -1
    right_ok = col != (W - 1)          # valid source for dx = +1
    top_ok = hw_idx >= W               # valid source for dy = -1
    bot_ok = hw_idx < (HW - W)         # valid source for dy = +1

    # (C, 9) depthwise weight with the BN scale (gamma / sqrt(var+eps))
    # already folded in; tap = ky*3 + kx.
    w = w_ref[...]
    # BN shift and the residual are folded into the accumulator init, so the
    # nine FMAs below are the entire per-element epilogue.
    acc = l + shift_ref[...]
    for tap in range(9):
        a = tap // 3 - 1               # dy in {-1, 0, +1}
        b = tap % 3 - 1                # dx in {-1, 0, +1}
        s = a * W + b                  # flat-index offset of the neighbor
        if s == 0:
            shifted = f
        else:
            # shifted[hw] = f[hw + s]  (wrap-around killed by the masks below)
            shifted = pltpu.roll(f, (-s) % HW, axis=1)
        mask = None
        if a == -1:
            mask = top_ok
        elif a == 1:
            mask = bot_ok
        if b == -1:
            mask = left_ok if mask is None else jnp.logical_and(mask, left_ok)
        elif b == 1:
            mask = right_ok if mask is None else jnp.logical_and(mask, right_ok)
        if mask is not None:
            shifted = jnp.where(mask, shifted, 0.0)
        acc = acc + w[:, tap:tap + 1] * shifted

    o_ref[0] = acc


def nonlocal_pallas(l, w_dw, gamma, beta, running_mean, running_var,
                    nl_c=0.5, nl_s=2, eps=1e-5):
    N, C, H, W = l.shape
    assert H % nl_s == 0 and W % nl_s == 0, "H, W must be divisible by nl_s"
    Cc = int(nl_c * C)                 # matches PyTorch int() truncation
    Hr, Wr = H // nl_s, W // nl_s
    HW, RHW = H * W, Hr * Wr

    l = l.astype(jnp.float32)
    # Glue: lane-dense flatten + strided spatial subsample (all C channels;
    # theta/phi are sliced off inside the kernel).
    l_flat = l.reshape(N, C, HW)
    g = l[:, :, ::nl_s, ::nl_s].reshape(N, C, RHW)

    # Glue: fold BN (inference mode) into per-channel terms.  The gamma/std
    # scale is folded into the (C, 9) depthwise weight (tiny algebraic fold,
    # not a full-tensor pre-scale), removing one (C, HW) multiply per batch
    # from the kernel; the shift stays as a (C, 1) add folded into the
    # accumulator init.
    inv_std = 1.0 / jnp.sqrt(running_var.astype(jnp.float32) + eps)
    gamma32 = gamma.astype(jnp.float32)
    scale = (gamma32 * inv_std).reshape(C, 1)
    shift = (beta.astype(jnp.float32)
             - running_mean.astype(jnp.float32) * gamma32 * inv_std).reshape(C, 1)
    # Depthwise weight (C, 1, 3, 3) -> one (C, 9) tile, tap = ky*3 + kx,
    # with BN scale folded in.
    w9 = w_dw.reshape(C, 9).astype(jnp.float32) * scale

    kernel = functools.partial(_nonlocal_kernel, H, W, Cc, float(W) / float(H))
    out_flat = pl.pallas_call(
        kernel,
        out_shape=jax.ShapeDtypeStruct((N, C, HW), jnp.float32),
        grid_spec=pltpu.PrefetchScalarGridSpec(
            num_scalar_prefetch=0,
            grid=(N,),
            in_specs=[
                pl.BlockSpec((1, C, RHW), lambda n: (n, 0, 0)),   # g
                pl.BlockSpec((1, C, HW), lambda n: (n, 0, 0)),    # l (residual+theta)
                pl.BlockSpec((C, 9), lambda n: (0, 0)),           # scaled dw weight
                pl.BlockSpec((C, 1), lambda n: (0, 0)),           # BN shift
            ],
            out_specs=pl.BlockSpec((1, C, HW), lambda n: (n, 0, 0)),
        ),
        compiler_params=pltpu.CompilerParams(
            dimension_semantics=("parallel",)),   # megacore over batch
    )(g, l_flat, w9, shift)
    return out_flat.reshape(N, C, H, W)


def nonlocal_reference(l, w_dw, gamma, beta, running_mean, running_var,
                       nl_c, nl_s, eps=1e-5):
    """Pure-JAX reference mirroring the PyTorch forward (eval-mode BN)."""
    N, C, H, W = l.shape
    Cc = int(nl_c * C)
    lr = l[:, :, ::nl_s, ::nl_s]
    theta, phi, g = l[:, :Cc], lr[:, :Cc], lr
    f1 = jnp.einsum('nihw,njhw->nij', phi, g)
    f = jnp.einsum('nij,nihw->njhw', f1, theta)
    f = f / H * W
    conv = lax.conv_general_dilated(
        f, w_dw, window_strides=(1, 1), padding=((1, 1), (1, 1)),
        dimension_numbers=('NCHW', 'OIHW', 'NCHW'), feature_group_count=C)
    bn = ((conv - running_mean[None, :, None, None])
          / jnp.sqrt(running_var[None, :, None, None] + eps)
          * gamma[None, :, None, None] + beta[None, :, None, None])
    return bn + l


if __name__ == "__main__":
    # H != W so the W/H scale, the flat-index row/column math and the
    # left/right vs top/bottom conv masks are all actually exercised.
    N, C, H, W = 2, 8, 16, 32
    nl_c, nl_s = 0.5, 2

    key = jax.random.PRNGKey(0)
    k1, k2, k3, k4 = jax.random.split(key, 4)
    l = jax.random.normal(k1, (N, C, H, W), jnp.float32)
    w_dw = jax.random.normal(k2, (C, 1, 3, 3), jnp.float32) * 0.1
    # NOTE: the module's ZeroInitBN zero-initialises gamma/beta (making the
    # whole non-local branch output exactly 0); use nonzero deterministic
    # values so the kernel's compute path is actually exercised.
    gamma = 1.0 + 0.5 * jax.random.normal(k3, (C,), jnp.float32)
    beta = 0.1 * jax.random.normal(k4, (C,), jnp.float32)
    running_mean = jnp.zeros((C,), jnp.float32)   # fresh running stats
    running_var = jnp.ones((C,), jnp.float32)

    out = nonlocal_pallas(l, w_dw, gamma, beta, running_mean, running_var,
                          nl_c=nl_c, nl_s=nl_s)
    out = jax.block_until_ready(out)

    ref = nonlocal_reference(l, w_dw, gamma, beta, running_mean, running_var,
                             nl_c, nl_s)
    max_err = float(jnp.max(jnp.abs(out - ref)))
    assert out.shape == (N, C, H, W)
    assert jnp.allclose(out, ref, atol=1e-4, rtol=1e-4), max_err
    print("KERNEL_OK")
</pallas_src>

<mosaic_0001>
module attributes {stable_mosaic.version = 11 : i64} {
  func.func @_nonlocal_kernel(%arg0: i32, %arg1: memref<1x8x128xf32, #tpu.memory_space<vmem>>, %arg2: memref<1x8x512xf32, #tpu.memory_space<vmem>>, %arg3: memref<8x9xf32, #tpu.memory_space<vmem>>, %arg4: memref<8x1xf32, #tpu.memory_space<vmem>>, %arg5: memref<1x8x512xf32, #tpu.memory_space<vmem>>) attributes {dimension_semantics = [#tpu.dimension_semantics<parallel>], iteration_bounds = array<i64: 2>, scalar_prefetch = 0 : i64, scratch_operands = 0 : i64, tpu.core_type = #tpu.core_type<tc>, window_params = [{transform_indices = @transform_0, window_bounds = array<i64: 1, 8, 128>}, {transform_indices = @transform_1, window_bounds = array<i64: 1, 8, 512>}, {pipeline_mode = #tpu.pipeline_mode<synchronous>, transform_indices = @transform_2, window_bounds = array<i64: 8, 9>}, {pipeline_mode = #tpu.pipeline_mode<synchronous>, transform_indices = @transform_3, window_bounds = array<i64: 8, 1>}, {transform_indices = @transform_4, window_bounds = array<i64: 1, 8, 512>}]} {
    %c0 = arith.constant 0 : index
    %c0_0 = arith.constant 0 : index
    %c0_1 = arith.constant 0 : index
    %0 = vector.load %arg2[%c0, %c0_0, %c0_1] : memref<1x8x512xf32, #tpu.memory_space<vmem>>, vector<1x8x512xf32>
    %1 = vector.shape_cast %0 : vector<1x8x512xf32> to vector<8x512xf32>
    %2 = vector.extract_strided_slice %1 {offsets = [0, 0], sizes = [4, 512], strides = [1, 1]} : vector<8x512xf32> to vector<4x512xf32>
    %c0_2 = arith.constant 0 : index
    %c0_3 = arith.constant 0 : index
    %c0_4 = arith.constant 0 : index
    %3 = vector.load %arg1[%c0_2, %c0_3, %c0_4] : memref<1x8x128xf32, #tpu.memory_space<vmem>>, vector<1x8x128xf32>
    %4 = vector.shape_cast %3 : vector<1x8x128xf32> to vector<8x128xf32>
    %5 = vector.extract_strided_slice %4 {offsets = [0, 0], sizes = [4, 128], strides = [1, 1]} : vector<8x128xf32> to vector<4x128xf32>
    %cst = arith.constant dense<0.000000e+00> : vector<4x8xf32>
    %6 = tpu.matmul %5, %4, %cst {dimension_numbers = #tpu.dot_dimension_numbers<[1], [1], [0], [0], [0, 0, 1, 0], [], []>} : vector<4x128xf32>, vector<8x128xf32>, vector<4x8xf32> -> vector<4x8xf32>
    %cst_5 = arith.constant 2.000000e+00 : f32
    %7 = vector.broadcast %cst_5 : f32 to vector<4x8xf32>
    %8 = arith.mulf %6, %7 : vector<4x8xf32>
    %cst_6 = arith.constant dense<0.000000e+00> : vector<8x512xf32>
    %9 = tpu.matmul %8, %2, %cst_6 {dimension_numbers = #tpu.dot_dimension_numbers<[0], [0], [1], [1], [0, 1, 1, 1], [], []>} : vector<4x8xf32>, vector<4x512xf32>, vector<8x512xf32> -> vector<8x512xf32>
    %10 = tpu.iota {dimensions = array<i32: 1>} : vector<8x512xi32>
    %c32_i32 = arith.constant 32 : i32
    %c0_i32 = arith.constant 0 : i32
    %11 = arith.cmpi eq, %c32_i32, %c0_i32 : i32
    %c1_i32 = arith.constant 1 : i32
    %12 = arith.select %11, %c1_i32, %c32_i32 : i32
    %13 = vector.broadcast %12 : i32 to vector<8x512xi32>
    %14 = arith.remsi %10, %13 : vector<8x512xi32>
    %c0_i32_7 = arith.constant 0 : i32
    %15 = vector.broadcast %c0_i32_7 : i32 to vector<8x512xi32>
    %16 = arith.cmpi ne, %14, %15 : vector<8x512xi32>
    %c0_i32_8 = arith.constant 0 : i32
    %17 = vector.broadcast %c0_i32_8 : i32 to vector<8x512xi32>
    %18 = arith.cmpi slt, %14, %17 : vector<8x512xi32>
    %c0_i32_9 = arith.constant 0 : i32
    %19 = arith.cmpi slt, %12, %c0_i32_9 : i32
    %20 = vector.broadcast %19 : i1 to vector<8x512xi1>
    %21 = vector.broadcast %20 : vector<8x512xi1> to vector<8x512xi1>
    %22 = arith.xori %18, %21 : vector<8x512xi1>
    %23 = arith.andi %22, %16 : vector<8x512xi1>
    %24 = vector.broadcast %12 : i32 to vector<8x512xi32>
    %25 = arith.addi %14, %24 : vector<8x512xi32>
    %26 = arith.select %23, %25, %14 : vector<8x512xi1>, vector<8x512xi32>
    %c0_i32_10 = arith.constant 0 : i32
    %27 = vector.broadcast %c0_i32_10 : i32 to vector<8x512xi32>
    %28 = arith.cmpi ne, %26, %27 : vector<8x512xi32>
    %c31_i32 = arith.constant 31 : i32
    %29 = vector.broadcast %c31_i32 : i32 to vector<8x512xi32>
    %30 = arith.cmpi ne, %26, %29 : vector<8x512xi32>
    %c32_i32_11 = arith.constant 32 : i32
    %31 = vector.broadcast %c32_i32_11 : i32 to vector<8x512xi32>
    %32 = arith.cmpi sge, %10, %31 : vector<8x512xi32>
    %c480_i32 = arith.constant 480 : i32
    %33 = vector.broadcast %c480_i32 : i32 to vector<8x512xi32>
    %34 = arith.cmpi slt, %10, %33 : vector<8x512xi32>
    %c0_12 = arith.constant 0 : index
    %c0_13 = arith.constant 0 : index
    %35 = vector.load %arg3[%c0_12, %c0_13] : memref<8x9xf32, #tpu.memory_space<vmem>>, vector<8x9xf32>
    %c0_14 = arith.constant 0 : index
    %c0_15 = arith.constant 0 : index
    %36 = vector.load %arg4[%c0_14, %c0_15] : memref<8x1xf32, #tpu.memory_space<vmem>>, vector<8x1xf32>
    %37 = vector.broadcast %36 : vector<8x1xf32> to vector<8x512xf32>
    %38 = arith.addf %1, %37 : vector<8x512xf32>
    %c33_i32 = arith.constant 33 : i32
    %39 = tpu.dynamic_rotate %9 by %c33_i32 dim 1 : vector<8x512xf32>, i32 -> vector<8x512xf32>
    %40 = arith.andi %32, %28 : vector<8x512xi1>
    %cst_16 = arith.constant 0.000000e+00 : f32
    %41 = vector.broadcast %cst_16 : f32 to vector<8x512xf32>
    %42 = arith.select %40, %39, %41 : vector<8x512xi1>, vector<8x512xf32>
    %43 = vector.extract_strided_slice %35 {offsets = [0, 0], sizes = [8, 1], strides = [1, 1]} : vector<8x9xf32> to vector<8x1xf32>
    %44 = vector.broadcast %43 : vector<8x1xf32> to vector<8x512xf32>
    %45 = arith.mulf %44, %42 : vector<8x512xf32>
    %46 = arith.addf %38, %45 : vector<8x512xf32>
    %c32_i32_17 = arith.constant 32 : i32
    %47 = tpu.dynamic_rotate %9 by %c32_i32_17 dim 1 : vector<8x512xf32>, i32 -> vector<8x512xf32>
    %cst_18 = arith.constant 0.000000e+00 : f32
    %48 = vector.broadcast %cst_18 : f32 to vector<8x512xf32>
    %49 = arith.select %32, %47, %48 : vector<8x512xi1>, vector<8x512xf32>
    %50 = vector.extract_strided_slice %35 {offsets = [0, 1], sizes = [8, 1], strides = [1, 1]} : vector<8x9xf32> to vector<8x1xf32>
    %51 = vector.broadcast %50 : vector<8x1xf32> to vector<8x512xf32>
    %52 = arith.mulf %51, %49 : vector<8x512xf32>
    %53 = arith.addf %46, %52 : vector<8x512xf32>
    %c31_i32_19 = arith.constant 31 : i32
    %54 = tpu.dynamic_rotate %9 by %c31_i32_19 dim 1 : vector<8x512xf32>, i32 -> vector<8x512xf32>
    %55 = arith.andi %32, %30 : vector<8x512xi1>
    %cst_20 = arith.constant 0.000000e+00 : f32
    %56 = vector.broadcast %cst_20 : f32 to vector<8x512xf32>
    %57 = arith.select %55, %54, %56 : vector<8x512xi1>, vector<8x512xf32>
    %58 = vector.extract_strided_slice %35 {offsets = [0, 2], sizes = [8, 1], strides = [1, 1]} : vector<8x9xf32> to vector<8x1xf32>
    %59 = vector.broadcast %58 : vector<8x1xf32> to vector<8x512xf32>
    %60 = arith.mulf %59, %57 : vector<8x512xf32>
    %61 = arith.addf %53, %60 : vector<8x512xf32>
    %c1_i32_21 = arith.constant 1 : i32
    %62 = tpu.dynamic_rotate %9 by %c1_i32_21 dim 1 : vector<8x512xf32>, i32 -> vector<8x512xf32>
    %cst_22 = arith.constant 0.000000e+00 : f32
    %63 = vector.broadcast %cst_22 : f32 to vector<8x512xf32>
    %64 = arith.select %28, %62, %63 : vector<8x512xi1>, vector<8x512xf32>
    %65 = vector.extract_strided_slice %35 {offsets = [0, 3], sizes = [8, 1], strides = [1, 1]} : vector<8x9xf32> to vector<8x1xf32>
    %66 = vector.broadcast %65 : vector<8x1xf32> to vector<8x512xf32>
    %67 = arith.mulf %66, %64 : vector<8x512xf32>
    %68 = arith.addf %61, %67 : vector<8x512xf32>
    %69 = vector.extract_strided_slice %35 {offsets = [0, 4], sizes = [8, 1], strides = [1, 1]} : vector<8x9xf32> to vector<8x1xf32>
    %70 = vector.broadcast %69 : vector<8x1xf32> to vector<8x512xf32>
    %71 = arith.mulf %70, %9 : vector<8x512xf32>
    %72 = arith.addf %68, %71 : vector<8x512xf32>
    %c511_i32 = arith.constant 511 : i32
    %73 = tpu.dynamic_rotate %9 by %c511_i32 dim 1 : vector<8x512xf32>, i32 -> vector<8x512xf32>
    %cst_23 = arith.constant 0.000000e+00 : f32
    %74 = vector.broadcast %cst_23 : f32 to vector<8x512xf32>
    %75 = arith.select %30, %73, %74 : vector<8x512xi1>, vector<8x512xf32>
    %76 = vector.extract_strided_slice %35 {offsets = [0, 5], sizes = [8, 1], strides = [1, 1]} : vector<8x9xf32> to vector<8x1xf32>
    %77 = vector.broadcast %76 : vector<8x1xf32> to vector<8x512xf32>
    %78 = arith.mulf %77, %75 : vector<8x512xf32>
    %79 = arith.addf %72, %78 : vector<8x512xf32>
    %c481_i32 = arith.constant 481 : i32
    %80 = tpu.dynamic_rotate %9 by %c481_i32 dim 1 : vector<8x512xf32>, i32 -> vector<8x512xf32>
    %81 = arith.andi %34, %28 : vector<8x512xi1>
    %cst_24 = arith.constant 0.000000e+00 : f32
    %82 = vector.broadcast %cst_24 : f32 to vector<8x512xf32>
    %83 = arith.select %81, %80, %82 : vector<8x512xi1>, vector<8x512xf32>
    %84 = vector.extract_strided_slice %35 {offsets = [0, 6], sizes = [8, 1], strides = [1, 1]} : vector<8x9xf32> to vector<8x1xf32>
    %85 = vector.broadcast %84 : vector<8x1xf32> to vector<8x512xf32>
    %86 = arith.mulf %85, %83 : vector<8x512xf32>
    %87 = arith.addf %79, %86 : vector<8x512xf32>
    %c480_i32_25 = arith.constant 480 : i32
    %88 = tpu.dynamic_rotate %9 by %c480_i32_25 dim 1 : vector<8x512xf32>, i32 -> vector<8x512xf32>
    %cst_26 = arith.constant 0.000000e+00 : f32
    %89 = vector.broadcast %cst_26 : f32 to vector<8x512xf32>
    %90 = arith.select %34, %88, %89 : vector<8x512xi1>, vector<8x512xf32>
    %91 = vector.extract_strided_slice %35 {offsets = [0, 7], sizes = [8, 1], strides = [1, 1]} : vector<8x9xf32> to vector<8x1xf32>
    %92 = vector.broadcast %91 : vector<8x1xf32> to vector<8x512xf32>
    %93 = arith.mulf %92, %90 : vector<8x512xf32>
    %94 = arith.addf %87, %93 : vector<8x512xf32>
    %c479_i32 = arith.constant 479 : i32
    %95 = tpu.dynamic_rotate %9 by %c479_i32 dim 1 : vector<8x512xf32>, i32 -> vector<8x512xf32>
    %96 = arith.andi %34, %30 : vector<8x512xi1>
    %cst_27 = arith.constant 0.000000e+00 : f32
    %97 = vector.broadcast %cst_27 : f32 to vector<8x512xf32>
    %98 = arith.select %96, %95, %97 : vector<8x512xi1>, vector<8x512xf32>
    %99 = vector.extract_strided_slice %35 {offsets = [0, 8], sizes = [8, 1], strides = [1, 1]} : vector<8x9xf32> to vector<8x1xf32>
    %100 = vector.broadcast %99 : vector<8x1xf32> to vector<8x512xf32>
    %101 = arith.mulf %100, %98 : vector<8x512xf32>
    %102 = arith.addf %94, %101 : vector<8x512xf32>
    %c0_28 = arith.constant 0 : index
    %c0_29 = arith.constant 0 : index
    %c0_30 = arith.constant 0 : index
    %103 = vector.load %arg5[%c0_28, %c0_29, %c0_30] : memref<1x8x512xf32, #tpu.memory_space<vmem>>, vector<1x8x512xf32>
    %104 = vector.shape_cast %103 : vector<1x8x512xf32> to vector<8x512xf32>
    %105 = vector.shape_cast %102 : vector<8x512xf32> to vector<1x8x512xf32>
    tpu.vector_store %arg5[%c0_28, %c0_29, %c0_30], %105 {strides = array<i32>} : memref<1x8x512xf32, #tpu.memory_space<vmem>>, vector<1x8x512xf32>,
    return
  }
  func.func @transform_0(%arg0: i32) -> (i32, i32, i32) {
    %c0_i32 = arith.constant 0 : i32
    %c0_i32_0 = arith.constant 0 : i32
    %c0_i32_1 = arith.constant 0 : i32
    return %arg0, %c0_i32, %c0_i32_0 : i32, i32, i32
  }
  func.func @transform_1(%arg0: i32) -> (i32, i32, i32) {
    %c0_i32 = arith.constant 0 : i32
    %c0_i32_0 = arith.constant 0 : i32
    %c0_i32_1 = arith.constant 0 : i32
    return %arg0, %c0_i32, %c0_i32_0 : i32, i32, i32
  }
  func.func @transform_2(%arg0: i32) -> (i32, i32) {
    %c0_i32 = arith.constant 0 : i32
    %c0_i32_0 = arith.constant 0 : i32
    %c0_i32_1 = arith.constant 0 : i32
    return %c0_i32, %c0_i32_0 : i32, i32
  }
  func.func @transform_3(%arg0: i32) -> (i32, i32) {
    %c0_i32 = arith.constant 0 : i32
    %c0_i32_0 = arith.constant 0 : i32
    %c0_i32_1 = arith.constant 0 : i32
    return %c0_i32, %c0_i32_0 : i32, i32
  }
  func.func @transform_4(%arg0: i32) -> (i32, i32, i32) {
    %c0_i32 = arith.constant 0 : i32
    %c0_i32_0 = arith.constant 0 : i32
    %c0_i32_1 = arith.constant 0 : i32
    return %arg0, %c0_i32, %c0_i32_0 : i32, i32, i32
  }
}

</mosaic_0001>

<bundles_post_ra>
// kernel: tpu_custom_call.1
= control target key start
LH: loop header
LB: loop body
LE: loop exit
PB: predicated region body
PF: predicated region fallthrough
CT: control target
= control target key end

     0   :  { %9 = vsyncpa [#allocation3], 0  ;;  %s1874_s0 = inlined_call_operand.hbm [shape: f32[2,8,128], index: 0, kind: input, shape index: {}]   ;;  %s1875_s1 = inlined_call_operand.hbm [shape: f32[2,8,512], index: 1, kind: input, shape index: {}]   ;;  %s1876_s2 = inlined_call_operand.vmem [shape: f32[8,9], index: 2, kind: input, shape index: {}]   ;;  %s1877_s3 = inlined_call_operand.vmem [shape: f32[8,1], index: 3, kind: input, shape index: {}]   ;;  %s1878_s4 = inlined_call_operand.hbm [shape: f32[2,8,512], index: 4, kind: output, shape index: {}]  }
   0x1   :  { %11 = vsyncpa [#allocation3 + $0x1], 0 }
   0x2   :  { %12 = vsyncpa [#allocation6], 0 }
   0x3   :  { %14 = vsyncpa [#allocation6 + $0x1], 0 }
   0x4   :  { %15 = vsyncpa [#allocation4], 0 }
   0x5   :  { %17 = vsyncpa [#allocation4 + $0x1], 0  ;;  %s1256_s15 = smov 0   ;;  %s1258_s16 = smov 0  }
   0x6   :  { %s1260_s17 = smov 0   ;;  %s1262_s18 = smov 0  }
   0x7 LB: > { %s1277_s19 = sadd.s32 4294967295, %s1207_s18   ;;  %s971_s20 = sadd.s32 4294967294, %s1207_s18   ;;  %s1207_s18 = sphi %s1262_s18, %s1919_s18   ;;  %s1203_s17 = sphi %s1260_s17, %s1918_s17   ;;  %s1199_s16 = sphi %s1258_s16, %s1917_s16   ;;  %s1195_s15 = sphi %s1256_s15, %s1916_s15  }
   0x8   : > { %s1281_s21 = sadd.s32 1, %s1207_s18   ;;  %s30_s22 = sadd.s32 1, %s1203_s17 }
   0x9   : > { %s27_s23 = ssub.s32 %s1207_s18, %s1281_s21  ;;  %p37_p0 = scmp.ne.s32.totalorder %s1203_s17, %s1199_s16 }
   0xa   : > { %p28_p1 = scmp.eq.s32.totalorder %s27_s23, 0  ;;  %p38_p2 = scmp.eq.s32.totalorder %s1207_s18, 0 }
   0xb   : > { %p43_p3 = scmp.ne.s32.totalorder %s1199_s16, %s1195_s15  ;;  %p44_p4 = scmp.eq.s32.totalorder %s1277_s19, 0 }
   0xc   : > { %s1293_s24 = scalar_select %p28_p1, %s1203_s17, %s30_s22  }
   0xd   : > { %p1295_p5 = por %p38_p2, %p37_p0  ;;  %p1299_p6 = por %p44_p4, %p43_p3 }
   0xe   : > { %p135_p7 = scmp.eq.s32.totalorder %s1277_s19, 1  ;;  %p141_p8 = scmp.eq.s32.totalorder %s971_s20, 1 }
   0xf   : > { %s1882_s26 = scalar_select %p1299_p6, 1, 0 }
  0x10   : > { %p1020_p10 = scmp.lt.s32.totalorder %s1207_s18, 2  ;;  %p1306_p11 = por %p135_p7, %p37_p0 }
  0x11   : > { %p1310_p12 = por %p141_p8, %p43_p3  ;;  %s1315_s29 = sand.u32 1, %s1203_s17  }
  0x12   : > { %s1883_s27 = scalar_select %p1306_p11, 1, 0 }
  0x13   : > { %s1884_s28 = scalar_select %p1310_p12, 1, 0 }
  0x14   : > { %s975_s30 = sshll.u32 %s1207_s18, 7  ;;  %s974_s5 = sshll.u32 %s1315_s29, 3 }
  0x15   : > { %s1322_s8 = scalar_lea.hbm %s1874_s0, %s975_s30  ;;  %s171_s9 = scalar_lea.vmem [#allocation2], %s974_s5 }
  0x16   : > { %s178_s10 = sshll.u32 %s171_s9, 4  ;;  %p1326_p13 = pnand %p1020_p10, %p1295_p5  ;;  %s1330_s10 = int_to_ptr.vmem [resolvable:$true] %s178_s10 }
  0x17   : > { %s168_s12 = scalar_lea.sflag [#allocation3], %s1315_s29  ;;  %s1083_s13 = scalar_lea.hbm %s1322_s8, 128 }
  0x18   : > { %p1084_p2 = scmp.ne.s32.totalorder %s1322_s8, %s1083_s13  ;;  %p1085_p3 = pneg %p1326_p13 }
  0x19   : > { %s1088_s22 = scalar_lea.hbm %s1874_s0, 256  ;;  %p1089_p5 = scmp.lt.s32.totalorder %s1322_s8, %s1874_s0 }
  0x1a   : > { %p1086_p4 = pnand %p1085_p3, %p1084_p2  ;;  %p1090_p8 = scmp.lt.s32.totalorder %s1088_s22, %s1083_s13 }
  0x1c   : > { %p1087_p7 = pneg %p1086_p4  ;;  %p1091_p10 = por %p1090_p8, %p1089_p5 }
  0x1e   : > { %p1092_p9 = pnand %p1091_p10, %p1087_p7 }
  0x20   : > { %1095 = shalt.err (!%p1092_p9)
}
  0x21   : > { %s1096_s30 = scalar_lea.vmem %s1330_s10, 128  ;;  %s1209_s5 = smov [#allocation2]  }
  0x22   : > { %p1097_p0 = scmp.ne.s32.totalorder %s1330_s10, %s1096_s30  ;;  %s1101_s6 = sshll.u32 %s1209_s5, 4  ;;  %s1102_s6 = int_to_ptr.vmem [resolvable:$false] %s1101_s6 }
  0x23   : > { %s1103_s7 = scalar_lea.vmem %s1102_s6, 256  ;;  %p1104_p1 = scmp.lt.s32.totalorder %s1330_s10, %s1102_s6 }
  0x24   : > { %p1099_p2 = pnand %p1097_p0, %p1085_p3  ;;  %p1105_p12 = scmp.lt.s32.totalorder %s1103_s7, %s1096_s30 }
  0x26   : > { %p1100_p4 = pneg %p1099_p2  ;;  %p1106_p11 = por %p1105_p12, %p1104_p1 }
  0x28   : > { %p1107_p5 = pnand %p1106_p11, %p1100_p4 }
  0x2a   : > { %1110 = shalt.err (!%p1107_p5)
}
  0x2b   : > { %1012 = dma.hbm_to_vmem [thread:$0]  (!%p1326_p13), %s1322_s8, 128, %s1330_s10, %s168_s12  }
  0x2c   : > { %p1886_p9 = scmp.lt.s32.totalorder %s1207_s18, 3  ;;  %p1887_p0 = scmp.ge.s32.totalorder %s1207_s18, 1 }
  0x2d   : > { %s976_s13 = sshll.u32 %s1315_s29, 5  ;;  %s994_s14 = sshll.u32 %s1207_s18, 9 }
  0x2e   : > { %p1363_p7 = pnand %p1887_p0, %p1886_p9  ;;  %s1372_s23 = scalar_lea.hbm %s1875_s1, %s994_s14 }
  0x2f   : > { %s189_s25 = scalar_lea.vmem [#allocation5], %s976_s13  ;;  %s186_s8 = scalar_lea.sflag [#allocation6], %s1315_s29 }
  0x30   : > { %s1888_s9 = scalar_select %p1363_p7, 1, 0 }
  0x31   : > { %s197_s30 = sshll.u32 %s189_s25, 4  ;;  %s1111_s10 = scalar_lea.hbm %s1372_s23, 512  ;;  %s198_s30 = int_to_ptr.vmem [resolvable:$true] %s197_s30 }
  0x32   : > { %p1112_p11 = scmp.ne.s32.totalorder %s1372_s23, %s1111_s10  ;;  %s1116_s6 = scalar_lea.hbm %s1875_s1, 1024 }
  0x33   : > { %p1117_p8 = scmp.lt.s32.totalorder %s1372_s23, %s1875_s1  ;;  %p1118_p10 = scmp.lt.s32.totalorder %s1116_s6, %s1111_s10 }
  0x34   : > { %p1114_p12 = pnand %p1112_p11, %p1085_p3 }
  0x35   : > { %p1119_p2 = por %p1118_p10, %p1117_p8 }
  0x36   : > { %p1115_p1 = pneg %p1114_p12 }
  0x38   : > { %p1120_p4 = pnand %p1119_p2, %p1115_p1 }
  0x3a   : > { %1123 = shalt.err (!%p1120_p4)
}
  0x3b   : > { %s1124_s13 = scalar_lea.vmem %s198_s30, 512  ;;  %s1210_s29 = smov [#allocation5]  }
  0x3c   : > { %p1125_p5 = scmp.ne.s32.totalorder %s198_s30, %s1124_s13  ;;  %s1129_s20 = sshll.u32 %s1210_s29, 4  ;;  %s1130_s20 = int_to_ptr.vmem [resolvable:$false] %s1129_s20 }
  0x3d   : > { %s1131_s22 = scalar_lea.vmem %s1130_s20, 1024  ;;  %p1132_p11 = scmp.lt.s32.totalorder %s198_s30, %s1130_s20 }
  0x3e   : > { %p1127_p9 = pnand %p1125_p5, %p1085_p3  ;;  %p1133_p12 = scmp.lt.s32.totalorder %s1131_s22, %s1124_s13 }
  0x40   : > { %p1128_p0 = pneg %p1127_p9  ;;  %p1134_p6 = por %p1133_p12, %p1132_p11 }
  0x42   : > { %p1135_p7 = pnand %p1134_p6, %p1128_p0 }
  0x44   : > { %1138 = shalt.err (!%p1135_p7)
}
  0x45   : > { %1015 = dma.hbm_to_vmem [thread:$0]  (!%p1326_p13), %s1372_s23, 512, %s198_s30, %s186_s8  }
  0x46   : > { %p1889_p1 = scmp.ne.s32.totalorder %s1888_s9, 0 }
  0x47   : > { %s1396_s25 = sand.u32 (!%p1889_p1), 1, %s1199_s16   ;;  %p1890_p3 = scmp.ne.s32.totalorder (!%p1889_p1), %s1882_s26, 0 }
  0x48   : > { %206 = sbr.rel (%p1889_p1) target bundleno = 817 (0x331), region = 36  ;;  %s980_s10 = sshll.u32 (!%p1889_p1), %s1396_s25, 3 }
  0x49   : > { %s209_s12 = scalar_lea.sflag (!%p1889_p1), [#allocation3], %s1396_s25  ;;  %s212_s5 = scalar_lea.vmem (!%p1889_p1), [#allocation2], %s980_s10 }
  0x4d   : > { %1182 = dma.done.wait (%p1890_p3), %s209_s12, 128  }
  0x4e   : > { %1184 = vsyncadd (%p1890_p3), %s209_s12, 4294967168  ;;  %s981_s11 = sshll.u32 %s1396_s25, 5  ;;  %s218_s9 = scalar_lea.sflag [#allocation6], %s1396_s25 }
  0x4f   : > { %s1408_s23 = scalar_lea.vmem [#allocation5], %s981_s11 }
  0x50   : > { %1186 = dma.done.wait (%p1890_p3), %s218_s9, 512  }
  0x51   : > { %1188 = vsyncadd (%p1890_p3), %s218_s9, 4294966784  ;;  %v1211_v0 = vmov 0.0   ;;  %vm1212_vm0 = vmmov 0   ;;  %v255_v1 = vld [vmem:[%s212_s5] sm:$0xff]  ;;  %v1415_v2 = vld [vmem:[%s1408_s23 + $0x8] sm:$0xff]  ;;  %vm363_vm1 = vcmask 1043456   ;;  %v518_v45 = vlaneseq }
  0x52   : > { %998 = vmatprep.subr.mxu0 %v1211_v0  ;;  %1000 = vmatprep.mubr.msk.f32.mxu0 %vm1212_vm0, %v1211_v0  ;;  %v1420_v3 = vld [vmem:[%s1408_s23] sm:$0xff]  ;;  %v1425_v5 = vld [vmem:[%s1408_s23 + $0x18] sm:$0xff]  ;;  %v587_v8 = vld [vmem:[%s1876_s2] sm:$0xff]  ;;  %v1213_v9 = vmov 0   ;;  %v1214_v10 = vmov 1   ;;  %v1215_v11 = vmov 2  }
  0x53   : > { %440 = vmatprep.mubr.f32.mxu1 %v1211_v0  ;;  %999 = vmatpush3.xpose.msra.mxu0 %v255_v1  ;;  %v1216_v12 = vmov 3   ;;  %v1217_v13 = vmov 6   ;;  %v1218_v14 = vmov 7   ;;  %v588_v15 = vld [vmem:[%s1877_s3] sm:$0xff]  ;;  %v1219_v16 = vmov 4   ;;  %s1222_s7 = smov 31  }
  0x54   : > { %983 = vmatprep.subr.msk.mxu1 %vm363_vm1, %v1415_v2  ;;  %1074 = vset.pattern.permute.xlu1 %v1213_v9  ;;  %v1220_v17 = vmov 5   ;;  %v1221_v18 = vmov 8   ;;  %vm359_vm2 = vcmask 31744   ;;  %v1436_v19 = vld [vmem:[%s1408_s23 + $0x10] sm:$0xff]  ;;  %s1223_s14 = smov 33   ;;  %s1224_s13 = smov 97  }
  0x55   : > { %984 = vmatpush1.msk.msra.mxu1 %vm363_vm1, %v1420_v3  ;;  %621 = vperm.xlu1 %1074, %v587_v8   ;;  %s1225_s29 = smov 32   ;;  %s1226_s20 = smov 1   ;;  %v1532_v47 = vand.u32 127, %v518_v45 }
  0x56   : > { %1001 = vmatmul.mubr.f32.vlgmr.msra.gmra.mxu0 %v255_v1  ;;  %986 = vmatprep.subr.msk.mxu1 %vm363_vm1, %v1425_v5  ;;  %s1227_s22 = smov 127   ;;  %s1228_s10 = smov 96  }
  0x57   : > { %s1229_s12 = smov 95   ;;  %v520_v50 = vadd.s32 128, %v1532_v47  ;;  %v521_v51 = vadd.s32 256, %v1532_v47  ;;  %vm606_vm3 = vcmp.lt.s32.totalorder %v1532_v47, 33  ;;  %vm669_vm4 = vcmp.lt.s32.totalorder %v1532_v47, 31  ;;  %s1797_s5 = scalar_lea.vmem [#allocation7], %s981_s11 }
  0x58   : > { %vm702_vm7 = vcmp.lt.s32.totalorder %v1532_v47, 1  ;;  %vm640_vm9 = vcmp.lt.s32.totalorder %v1532_v47, 32  ;;  %vm579_vm11 = vcmp.ge.s32.totalorder %v1532_v47, 32  ;;  %vm743_vm12 = vcmp.lt.s32.totalorder %v1532_v47, 127  ;;  %s995_s11 = sshll.u32 %s1277_s19, 9  ;;  %s878_s9 = sshll.u32 %s1797_s5, 4  ;;  %s879_s9 = int_to_ptr.vmem [resolvable:$true] %s878_s9 }
  0x59   : > { %1075 = vset.pattern.permute.xlu1 %v1214_v10  ;;  %v534_v54 = vand.u32 31, %v520_v50  ;;  %v541_v55 = vand.u32 31, %v521_v51  ;;  %vm772_vm0 = vcmp.lt.s32.totalorder %v1532_v47, 97  ;;  %s1835_s30 = scalar_lea.hbm %s1878_s4, %s995_s11  ;;  %s864_s8 = scalar_lea.sflag [#allocation4], %s1396_s25 }
  0x5a   : > { %650 = vperm.xlu1 %1075, %v587_v8   ;;  %s1139_s6 = scalar_lea.vmem %s879_s9, 512  ;;  %p1913_p13 = scmp.ne.s32.totalorder %s1883_s27, 0 }
  0x5b   : > { %vm1544_vm5 = vcmp.ne.s32.totalorder %v534_v54, 0  ;;  %vm1548_vm6 = vcmp.ne.s32.totalorder %v541_v55, 0  ;;  %vm1558_vm8 = vcmp.ne.s32.totalorder %v541_v55, 31  ;;  %vm1585_vm10 = vcmp.ne.s32.totalorder %v534_v54, 31  ;;  %p1140_p6 = scmp.ne.s32.totalorder %s879_s9, %s1139_s6  ;;  %s1230_s19 = smov [#allocation7]  }
  0x5d   : > { %p1141_p7 = pnand %p1140_p6, %p1913_p13 }
  0x5e   : > { %1076 = vset.pattern.permute.xlu1 %v1215_v11 }
  0x5f   : > { %683 = vperm.xlu1 %1076, %v587_v8   ;;  %p1142_p8 = pneg %p1141_p7 }
  0x63   : > { %1077 = vset.pattern.permute.xlu1 %v1216_v12 }
  0x64   : > { %712 = vperm.xlu1 %1077, %v587_v8  }
  0x68   : > { %1080 = vset.pattern.permute.xlu1 %v1217_v13 }
  0x69   : > { %786 = vperm.xlu1 %1080, %v587_v8  }
  0x6d   : > { %1081 = vset.pattern.permute.xlu1 %v1218_v14 }
  0x6e   : > { %815 = vperm.xlu1 %1081, %v587_v8  }
  0xd0   : > { %v1494_v25 = vpop.permute.xlu1 %621 }
  0xd5   : > { %v1498_v26 = vpop.permute.xlu1 %650 }
  0xda   : > { %v1500_v27 = vpop.permute.xlu1 %683 }
  0xdf   : > { %v1502_v28 = vpop.permute.xlu1 %712 }
  0xe4   : > { %v1504_v29 = vpop.permute.xlu1 %786 }
  0xe9   : > { %v1508_v31 = vpop.permute.xlu1 %815 }
 0x116   : > { %v322_v4 = vpop.f32.mrf.mxu0 }
 0x117   : > { %v326_v6 = vmul.f32 2.0, %v322_v4 }
 0x118   : > { %v1002_v7 = vpop.f32.mrf.mxu0 }
 0x119   : > { %327 = vxpose.xlu0.b32.start.end [1/1] (short) (narrow) %v326_v6, 8 }
 0x142   : > { %1073 = vset.pattern.permute.xlu0 %v1213_v9 }
 0x143   : > { %591 = vperm.xlu0 %1073, %v588_v15  }
 0x147   : > { %1078 = vset.pattern.permute.xlu0 %v1219_v16 }
 0x148   : > { %724 = vperm.xlu0 %1078, %v587_v8  }
 0x14c   : > { %1079 = vset.pattern.permute.xlu0 %v1220_v17 }
 0x14d   : > { %753 = vperm.xlu0 %1079, %v587_v8  }
 0x151   : > { %1082 = vset.pattern.permute.xlu0 %v1221_v18 }
 0x152   : > { %848 = vperm.xlu0 %1082, %v587_v8  }
 0x195   : > { %v343_v20 = vpop.trf.xlu0 }
 0x196   : > { %985 = vmatmul.mubr.msk.f32.vlgmr.msra.gmra.mxu1 %vm359_vm2, %v343_v20 }
 0x197   : > { %987 = vmatpush1.msk.msra.mxu1 %vm363_vm1, %v1436_v19  ;;  %511 = vmatprep.mubr.f32.mxu1 %v1211_v0 }
 0x19a   : > { %988 = vmatmul.mubr.msk.f32.vlgmr.msra.gmra.mxu1 %vm359_vm2, %v343_v20 }
 0x1be   : > { %v1506_v30 = vpop.permute.xlu0 %591 }
 0x1bf   : > { %v596_v0 = vadd.f32 %v1506_v30, %v1436_v19  ;;  %v595_v13 = vadd.f32 %v1506_v30, %v1415_v2 }
 0x1c3   : > { %v1510_v32 = vpop.permute.xlu0 %724 }
 0x1c8   : > { %v1514_v34 = vpop.permute.xlu0 %753 }
 0x1cd   : > { %v1518_v36 = vpop.permute.xlu0 %848 }
 0x256   : > { %v1440_v21 = vpop.f32.mrf.mxu1 }
 0x257   : > { %661 = vrot.lane.b32.xlu0 %v1440_v21, %s1222_s7  ;;  %598 = vrot.lane.b32.xlu1 %v1440_v21, %s1223_s14 }
 0x258   : > { %v1450_v22 = vpop.f32.mrf.mxu1 }
 0x25a   : > { %v1456_v23 = vpop.f32.mrf.mxu1 }
 0x25b   : > { %764 = vrot.lane.b32.xlu0 %v1440_v21, %s1224_s13  ;;  %632 = vrot.lane.b32.xlu1 %v1440_v21, %s1225_s29 }
 0x25c   : > { %v1468_v24 = vpop.f32.mrf.mxu1 }
 0x25f   : > { %694 = vrot.lane.b32.xlu1 %v1440_v21, %s1226_s20  ;;  %737 = vrot.lane.b32.xlu0 %v1450_v22, %s1227_s22 }
 0x263   : > { %735 = vrot.lane.b32.xlu1 %v1440_v21, %s1227_s22  ;;  %799 = vrot.lane.b32.xlu0 %v1450_v22, %s1228_s10 }
 0x267   : > { %797 = vrot.lane.b32.xlu1 %v1440_v21, %s1228_s10  ;;  %665 = vrot.lane.b32.xlu0 %v1456_v23, %s1222_s7 }
 0x26b   : > { %600 = vrot.lane.b32.xlu1 %v1450_v22, %s1223_s14  ;;  %698 = vrot.lane.b32.xlu0 %v1456_v23, %s1226_s20 }
 0x26f   : > { %634 = vrot.lane.b32.xlu1 %v1450_v22, %s1225_s29  ;;  %768 = vrot.lane.b32.xlu0 %v1456_v23, %s1224_s13 }
 0x273   : > { %663 = vrot.lane.b32.xlu1 %v1450_v22, %s1222_s7  ;;  %741 = vrot.lane.b32.xlu0 %v1468_v24, %s1227_s22 }
 0x277   : > { %696 = vrot.lane.b32.xlu1 %v1450_v22, %s1226_s20  ;;  %826 = vrot.lane.b32.xlu0 %v1440_v21, %s1229_s12 }
 0x27b   : > { %766 = vrot.lane.b32.xlu1 %v1450_v22, %s1224_s13  ;;  %830 = vrot.lane.b32.xlu0 %v1456_v23, %s1229_s12 }
 0x27f   : > { %602 = vrot.lane.b32.xlu1 %v1456_v23, %s1223_s14 }
 0x283   : > { %636 = vrot.lane.b32.xlu1 %v1456_v23, %s1225_s29 }
 0x287   : > { %739 = vrot.lane.b32.xlu1 %v1456_v23, %s1227_s22 }
 0x28b   : > { %801 = vrot.lane.b32.xlu1 %v1456_v23, %s1228_s10 }
 0x28f   : > { %604 = vrot.lane.b32.xlu1 %v1468_v24, %s1223_s14 }
 0x293   : > { %638 = vrot.lane.b32.xlu1 %v1468_v24, %s1225_s29 }
 0x297   : > { %667 = vrot.lane.b32.xlu1 %v1468_v24, %s1222_s7  ;;  %s1143_s7 = sshll.u32 %s1230_s19, 4  ;;  %s1144_s7 = int_to_ptr.vmem [resolvable:$false] %s1143_s7 }
 0x298   : > { %s1145_s14 = scalar_lea.vmem %s1144_s7, 1024  ;;  %p1146_p10 = scmp.lt.s32.totalorder %s879_s9, %s1144_s7 }
 0x299   : > { %p1147_p2 = scmp.lt.s32.totalorder %s1145_s14, %s1139_s6 }
 0x29b   : > { %700 = vrot.lane.b32.xlu1 %v1468_v24, %s1226_s20  ;;  %p1148_p4 = por %p1147_p2, %p1146_p10 }
 0x29d   : > { %p1149_p5 = pnand %p1148_p4, %p1142_p8 }
 0x29f   : > { %828 = vrot.lane.b32.xlu1 %v1450_v22, %s1229_s12 }
 0x2a3   : > { %770 = vrot.lane.b32.xlu1 %v1468_v24, %s1224_s13 }
 0x2a7   : > { %803 = vrot.lane.b32.xlu1 %v1468_v24, %s1228_s10 }
 0x2ab   : > { %832 = vrot.lane.b32.xlu1 %v1468_v24, %s1229_s12 }
 0x2c9   : > { %v1512_v33 = vpop.permute.xlu1 %598  ;;  %v1524_v39 = vpop.permute.xlu0 %661 }
 0x2cd   : > { %v1516_v35 = vpop.permute.xlu1 %632  ;;  %v1528_v41 = vpop.permute.xlu0 %764 }
 0x2d1   : > { %v1520_v37 = vpop.permute.xlu1 %694  ;;  %v1530_v44 = vpop.permute.xlu0 %737 }
 0x2d5   : > { %v1522_v38 = vpop.permute.xlu1 %735  ;;  %v1534_v48 = vpop.permute.xlu0 %799 }
 0x2d9   : > { %v1526_v40 = vpop.permute.xlu1 %797  ;;  %v1540_v53 = vpop.permute.xlu0 %665 }
 0x2dd   : > { %v601_v42 = vpop.permute.xlu1 %600  ;;  %v1569_v1 = vpop.permute.xlu0 %698 }
 0x2de   : > { %v609_v60 = vsel %vm606_vm3, %v1512_v33, %v601_v42 }
 0x2df   : > { %v616_v8 = vsel %vm1544_vm5, %v609_v60, 0.0 }
 0x2e0   : > { %v625_v16 = vmul.f32 %v1494_v25, %v616_v8 }
 0x2e1   : > { %v635_v43 = vpop.permute.xlu1 %634 }
 0x2e2   : > { %v643_v2 = vsel %vm640_vm9, %v1516_v35, %v635_v43  ;;  %v629_v54 = vadd.f32 %v625_v16, %v595_v13 }
 0x2e3   : > { %v654_v55 = vmul.f32 %v1498_v26, %v643_v2 }
 0x2e5   : > { %v664_v46 = vpop.permute.xlu1 %663  ;;  %v658_v8 = vadd.f32 %v654_v55, %v629_v54 }
 0x2e6   : > { %v671_v62 = vsel %vm669_vm4, %v664_v46, %v1540_v53  ;;  %v672_v17 = vsel %vm669_vm4, %v1524_v39, %v664_v46 }
 0x2e7   : > { %v680_v9 = vsel %vm1558_vm8, %v671_v62, 0.0  ;;  %v679_v46 = vsel %vm1585_vm10, %v672_v17, 0.0 }
 0x2e8   : > { %v688_v18 = vmul.f32 %v1500_v27, %v680_v9 }
 0x2e9   : > { %v697_v49 = vpop.permute.xlu1 %696 }
 0x2ea   : > { %v704_v6 = vsel %vm702_vm7, %v697_v49, %v1569_v1  ;;  %v705_v45 = vsel %vm702_vm7, %v1520_v37, %v697_v49 }
 0x2eb   : > { %v709_v15 = vsel %vm1548_vm6, %v704_v6, 0.0  ;;  %v708_v49 = vsel %vm1544_vm5, %v705_v45, 0.0 }
 0x2ec   : > { %v717_v50 = vmul.f32 %v1502_v28, %v709_v15  ;;  %v716_v9 = vmul.f32 %v1502_v28, %v708_v49 }
 0x2ed   : > { %v1538_v52 = vpop.permute.xlu1 %766 }
 0x2f1   : > { %v603_v56 = vpop.permute.xlu1 %602 }
 0x2f2   : > { %v608_v59 = vsel %vm606_vm3, %v601_v42, %v603_v56  ;;  %v1602_v42 = vadd.s32 384, %v1532_v47 }
 0x2f3   : > { %v617_v63 = vsel %vm1548_vm6, %v608_v59, 0.0 }
 0x2f4   : > { %v626_v4 = vmul.f32 %v1494_v25, %v617_v63  ;;  %v548_v62 = vand.u32 31, %v1602_v42  ;;  %v527_v63 = vand.u32 31, %v1532_v47 }
 0x2f5   : > { %v637_v7 = vpop.permute.xlu1 %636 }
 0x2f6   : > { %v630_v10 = vadd.f32 %v626_v4, %v596_v0  ;;  %v642_v11 = vsel %vm640_vm9, %v635_v43, %v637_v7  ;;  %v729_v43 = vmul.f32 %v1510_v32, %v1456_v23  ;;  %v1619_v0 = vpop.permute.xlu0 %768  ;;  %v687_v4 = vmul.f32 %v1500_v27, %v679_v46 }
 0x2f7   : > { %v655_v12 = vmul.f32 %v1498_v26, %v642_v11  ;;  %vm1626_vm13 = vcmp.ne.s32.totalorder %v548_v62, 0  ;;  %vm1631_vm14 = vcmp.ne.s32.totalorder %v527_v63, 0  ;;  %vm1662_vm1 = vcmp.ne.s32.totalorder %v527_v63, 31 }
 0x2f8   : > { %vm1643_vm15 = vmand %vm579_vm11, %vm1631_vm14  ;;  %v691_v17 = vadd.f32 %v687_v4, %v658_v8  ;;  %v774_v54 = vsel %vm772_vm0, %v1538_v52, %v1619_v0  ;;  %v594_v63 = vadd.f32 %v1506_v30, %v1420_v3  ;;  %vm1682_vm2 = vcmp.ne.s32.totalorder %v548_v62, 31 }
 0x2f9   : > { %v659_v19 = vadd.f32 %v655_v12, %v630_v10  ;;  %v1596_v20 = vpop.permute.xlu1 %739  ;;  %v746_v3 = vsel %vm743_vm12, %v1522_v38, %v1530_v44 }
 0x2fa   : > { %v745_v11 = vsel %vm743_vm12, %v1530_v44, %v1596_v20  ;;  %v742_v2 = vpop.permute.xlu0 %741  ;;  %v720_v45 = vadd.f32 %v716_v9, %v691_v17  ;;  %v748_v17 = vsel %vm1662_vm1, %v746_v3, 0.0 }
 0x2fb   : > { %v692_v51 = vadd.f32 %v688_v18, %v659_v19  ;;  %v749_v19 = vsel %vm1585_vm10, %v745_v11, 0.0  ;;  %v756_v10 = vmul.f32 %v1514_v34, %v748_v17 }
 0x2fd   : > { %v721_v59 = vadd.f32 %v717_v50, %v692_v51  ;;  %v1613_v60 = vpop.permute.xlu1 %801 }
 0x2fe   : > { %v1712_v44 = vpop.permute.xlu0 %826 }
 0x2ff   : > { %v1622_v6 = vadd.f32 %v729_v43, %v721_v59  ;;  %v728_v59 = vmul.f32 %v1510_v32, %v1450_v22  ;;  %v757_v43 = vmul.f32 %v1514_v34, %v749_v19 }
 0x301   : > { %v605_v12 = vpop.permute.xlu1 %604 }
 0x302   : > { %v607_v15 = vsel %vm606_vm3, %v603_v56, %v605_v12  ;;  %v610_v16 = vsel %vm606_vm3, %v605_v12, %v1512_v33  ;;  %v597_v33 = vadd.f32 %v1506_v30, %v1425_v5  ;;  %vm1691_vm3 = vmand %vm579_vm11, %vm1662_vm1  ;;  %v782_v30 = vsel %vm1544_vm5, %v774_v54, 0.0 }
 0x303   : > { %v618_v18 = vsel %vm1626_vm13, %v607_v15, 0.0  ;;  %v615_v50 = vsel %vm1643_vm15, %v610_v16, 0.0  ;;  %v790_v19 = vmul.f32 %v1504_v29, %v782_v30  ;;  %vm586_vm5 = vcmp.lt.s32.totalorder %v1602_v42, 480 }
 0x304   : > { %v627_v56 = vmul.f32 %v1494_v25, %v618_v18  ;;  %v775_v18 = vsel %vm772_vm0, %v1528_v41, %v1538_v52 }
 0x305   : > { %v639_v51 = vpop.permute.xlu1 %638 }
 0x306   : > { %v644_v55 = vsel %vm640_vm9, %v639_v51, %v1516_v35  ;;  %v641_v5 = vsel %vm640_vm9, %v637_v7, %v639_v51  ;;  %v624_v35 = vmul.f32 %v1494_v25, %v615_v50  ;;  %v727_v7 = vmul.f32 %v1510_v32, %v1440_v21 }
 0x307   : > { %v645_v49 = vsel %vm579_vm11, %v644_v55, 0.0  ;;  %v732_v25 = vadd.f32 %v728_v59, %v720_v45  ;;  %v631_v62 = vadd.f32 %v627_v56, %v597_v33  ;;  %v656_v11 = vmul.f32 %v1498_v26, %v641_v5 }
 0x308   : > { %v653_v9 = vmul.f32 %v1498_v26, %v645_v49  ;;  %vm805_vm9 = vcmp.lt.s32.totalorder %v1532_v47, 96 }
 0x309   : > { %v668_v8 = vpop.permute.xlu1 %667  ;;  %v761_v57 = vadd.f32 %v757_v43, %v732_v25  ;;  %v807_v26 = vsel %vm805_vm9, %v1534_v48, %v1613_v60  ;;  %v660_v56 = vadd.f32 %v656_v11, %v631_v62  ;;  %v808_v25 = vsel %vm805_vm9, %v1526_v40, %v1534_v48 }
 0x30a   : > { %v670_v12 = vsel %vm669_vm4, %v1540_v53, %v668_v8  ;;  %v673_v21 = vsel %vm669_vm4, %v668_v8, %v1524_v39  ;;  %v628_v53 = vadd.f32 %v624_v35, %v594_v63  ;;  %vm834_vm4 = vcmp.lt.s32.totalorder %v1532_v47, 95  ;;  %v831_v63 = vpop.permute.xlu0 %830 }
 0x30b   : > { %v678_v13 = vsel %vm1691_vm3, %v673_v21, 0.0  ;;  %v681_v15 = vsel %vm1682_vm2, %v670_v12, 0.0  ;;  %v794_v33 = vadd.f32 %v790_v19, %v761_v57  ;;  %v819_v54 = vmul.f32 %v1508_v31, %v807_v26 }
 0x30c   : > { %v686_v16 = vmul.f32 %v1500_v27, %v678_v13  ;;  %v689_v39 = vmul.f32 %v1500_v27, %v681_v15  ;;  %v657_v50 = vadd.f32 %v653_v9, %v628_v53  ;;  %v744_v35 = vsel %vm743_vm12, %v1596_v20, %v742_v2 }
 0x30d   : > { %v701_v45 = vpop.permute.xlu1 %700  ;;  %v730_v20 = vmul.f32 %v1510_v32, %v1468_v24  ;;  %v750_v62 = vsel %vm1558_vm8, %v744_v35, 0.0  ;;  %v823_v8 = vadd.f32 %v819_v54, %v794_v33  ;;  %v818_v15 = vmul.f32 %v1508_v31, %v808_v25 }
 0x30e   : > { %v703_v51 = vsel %vm702_vm7, %v1569_v1, %v701_v45  ;;  %v706_v27 = vsel %vm702_vm7, %v701_v45, %v1520_v37  ;;  %v690_v59 = vadd.f32 %v686_v16, %v657_v50  ;;  %v693_v43 = vadd.f32 %v689_v39, %v660_v56  ;;  %vm1780_vm7 = vmand %vm586_vm5, %vm1626_vm13 }
 0x30f   : > { %v707_v52 = vsel %vm1631_vm14, %v706_v27, 0.0  ;;  %v710_v55 = vsel %vm1626_vm13, %v703_v51, 0.0  ;;  %v747_v1 = vsel %vm743_vm12, %v742_v2, %v1522_v38  ;;  %v781_v37 = vsel %vm1631_vm14, %v775_v18, 0.0 }
 0x310   : > { %v715_v5 = vmul.f32 %v1502_v28, %v707_v52  ;;  %v718_v49 = vmul.f32 %v1502_v28, %v710_v55  ;;  %v751_v12 = vsel %vm1682_vm2, %v747_v1, 0.0  ;;  %v789_v21 = vmul.f32 %v1504_v29, %v781_v37 }
 0x311   : > { %v829_v22 = vpop.permute.xlu1 %828  ;;  %v758_v46 = vmul.f32 %v1514_v34, %v750_v62  ;;  %v759_v53 = vmul.f32 %v1514_v34, %v751_v12 }
 0x312   : > { %v719_v3 = vadd.f32 %v715_v5, %v690_v59  ;;  %v722_v30 = vadd.f32 %v718_v49, %v693_v43  ;;  %v836_v28 = vsel %vm834_vm4, %v829_v22, %v831_v63  ;;  %v837_v38 = vsel %vm834_vm4, %v1712_v44, %v829_v22 }
 0x313   : > { %v844_v2 = vsel %vm1585_vm10, %v836_v28, 0.0  ;;  %v843_v48 = vsel %vm1662_vm1, %v837_v38, 0.0  ;;  %v762_v17 = vadd.f32 %v758_v46, %v1622_v6 }
 0x314   : > { %v731_v9 = vadd.f32 %v727_v7, %v719_v3  ;;  %v852_v11 = vmul.f32 %v1518_v36, %v844_v2  ;;  %v734_v14 = vadd.f32 %v730_v20, %v722_v30 }
 0x315   : > { %v771_v32 = vpop.permute.xlu1 %770 }
 0x316   : > { %v760_v7 = vadd.f32 %v756_v10, %v731_v9  ;;  %v856_v57 = vadd.f32 %v852_v11, %v823_v8  ;;  %v773_v13 = vsel %vm772_vm0, %v1619_v0, %v771_v32  ;;  %v776_v23 = vsel %vm772_vm0, %v771_v32, %v1528_v41 }
 0x317   : > { %v783_v26 = vsel %vm1548_vm6, %v773_v13, 0.0  ;;  %v784_v0 = vsel %vm1780_vm7, %v776_v23, 0.0  ;;  %v851_v41 = vmul.f32 %v1518_v36, %v843_v48  ;;  %v763_v19 = vadd.f32 %v759_v53, %v734_v14  ;;  %vm842_vm6 = vmand %vm586_vm5, %vm1682_vm2 }
 0x318   : > { %v793_v16 = vadd.f32 %v789_v21, %v760_v7  ;;  %860 = vst [vmem:[%s1797_s5 + $0x8] sm:$0xff] %v856_v57  ;;  %v791_v39 = vmul.f32 %v1504_v29, %v783_v26  ;;  %v792_v58 = vmul.f32 %v1504_v29, %v784_v0 }
 0x319   : > { %v804_v18 = vpop.permute.xlu1 %803 }
 0x31a   : > { %v822_v34 = vadd.f32 %v818_v15, %v793_v16  ;;  %v806_v45 = vsel %vm805_vm9, %v1613_v60, %v804_v18  ;;  %v809_v50 = vsel %vm805_vm9, %v804_v18, %v1526_v40  ;;  %v795_v56 = vadd.f32 %v791_v39, %v762_v17 }
 0x31b   : > { %v813_v6 = vsel %vm586_vm5, %v809_v50, 0.0  ;;  %v796_v27 = vadd.f32 %v792_v58, %v763_v19  ;;  %v820_v29 = vmul.f32 %v1508_v31, %v806_v45 }
 0x31c   : > { %v855_v51 = vadd.f32 %v851_v41, %v822_v34  ;;  %v821_v33 = vmul.f32 %v1508_v31, %v813_v6 }
 0x31d   : > { %v833_v60 = vpop.permute.xlu1 %832  ;;  %v824_v42 = vadd.f32 %v820_v29, %v795_v56 }
 0x31e   : > { %859 = vst [vmem:[%s1797_s5] sm:$0xff] %v855_v51  ;;  %v825_v40 = vadd.f32 %v821_v33, %v796_v27  ;;  %v835_v54 = vsel %vm834_vm4, %v831_v63, %v833_v60  ;;  %v838_v52 = vsel %vm834_vm4, %v833_v60, %v1712_v44 }
 0x31f   : > { %v845_v31 = vsel %vm1558_vm8, %v835_v54, 0.0  ;;  %v846_v4 = vsel %vm842_vm6, %v838_v52, 0.0 }
 0x320   : > { %v853_v55 = vmul.f32 %v1518_v36, %v845_v31  ;;  %v854_v59 = vmul.f32 %v1518_v36, %v846_v4 }
 0x322   : > { %v857_v43 = vadd.f32 %v853_v55, %v824_v42  ;;  %v858_v5 = vadd.f32 %v854_v59, %v825_v40 }
 0x324   : > { %861 = vst [vmem:[%s1797_s5 + $0x10] sm:$0xff] %v857_v43  ;;  %862 = vst [vmem:[%s1797_s5 + $0x18] sm:$0xff] %v858_v5 }
 0x325   : > { %1152 = shalt.err (!%p1149_p5)
}
 0x326   : > { %s1153_s13 = scalar_lea.hbm %s1835_s30, 512  ;;  %s1157_s20 = scalar_lea.hbm %s1878_s4, 1024 }
 0x327   : > { %p1154_p9 = scmp.ne.s32.totalorder %s1835_s30, %s1153_s13  ;;  %p1158_p12 = scmp.lt.s32.totalorder %s1835_s30, %s1878_s4 }
 0x328   : > { %p1159_p1 = scmp.lt.s32.totalorder %s1157_s20, %s1153_s13 }
 0x329   : > { %p1155_p0 = pnand %p1154_p9, %p1913_p13 }
 0x32a   : > { %p1160_p3 = por %p1159_p1, %p1158_p12 }
 0x32b   : > { %p1156_p11 = pneg %p1155_p0 }
 0x32d   : > { %p1161_p6 = pnand %p1160_p3, %p1156_p11 }
 0x32f   : > { %1164 = shalt.err (!%p1161_p6)
}
 0x330   : > { %1007 = dma.vmem_to_hbm [thread:$0]  (%p1913_p13), %s879_s9, 512, %s1835_s30, %s864_s8  }
 0x331 PF: > { %s890_s12 = sand.u32 1, %s1195_s15   ;;  %p1914_p7 = scmp.ne.s32.totalorder %s1884_s28, 0 }
 0x332   : > { %p1915_p8 = scmp.ge.s32.totalorder %s1207_s18, 2  ;;  %s891_s5 = scalar_lea.sflag [#allocation4], %s890_s12 }
 0x334   : > { %p1017_p10 = pnand %p1915_p8, %p1914_p7 }
 0x336   : > { %p1018_p2 = pneg %p1017_p10 }
 0x338   : > { %1190 = dma.done.wait (%p1018_p2), %s891_s5, 512  }
 0x339   : > { %1192 = vsyncadd (%p1018_p2), %s891_s5, 4294966784  ;;  %p20_p4 = scmp.ge.s32.totalorder %s1281_s21, 4   ;;  %s1916_s15 = smov %s1199_s16 }
 0x33a   : > { %s1917_s16 = smov %s1203_s17  ;;  %s1918_s17 = smov %s1293_s24 }
 0x33b   : > { %s1919_s18 = smov %s1281_s21  ;;  %22 = sbr.rel (!%p20_p4) target bundleno = 7 (0x7), region = 94 }
 0x340   :  { %896 = vsyncpa [#allocation3], 1 }
 0x341   :  { %898 = vsyncpa [#allocation3 + $0x1], 1 }
 0x342   :  { %899 = vsyncpa [#allocation6], 1 }
 0x343   :  { %901 = vsyncpa [#allocation6 + $0x1], 1 }
 0x344   :  { %902 = vsyncpa [#allocation4], 1 }
 0x345   :  { %904 = vsyncpa [#allocation4 + $0x1], 1 }

</bundles_post_ra>
